<compile_context>
chip_gen: v5e
topology: v5e:2x2
jax: 0.10.0
libtpu: 0.0.40
codegen_flags: <defaults>
</compile_context>

<pallas_src>
import math

import jax
import jax.numpy as jnp
from jax import lax
from jax.experimental import pallas as pl
from jax.experimental.pallas import tpu as pltpu


def _mustd_kernel(x_ref,
                  w1aug_ref, w1sT_ref, b1T_ref,
                  w2T_ref, b2T_ref,
                  woT_ref, boT_ref,
                  outT_ref):
    x = x_ref[...]                                   # (TB, Tin) streamed tile
    tin = x.shape[1]

    # Fused relayout + first Linear (mean term already folded into W1x).
    # LHS rows [0:Tin] = eye(Tin)  -> x^T ; rows [Tin:] = W1x^T -> (x @ W1x)^T.
    z = lax.dot_general(w1aug_ref[...], x,
                        dimension_numbers=(((1,), (1,)), ((), ())),
                        preferred_element_type=jnp.float32)   # (Tin+H1, TB)
    xT = z[:tin]                                     # (Tin, TB), lane-dense
    h = z[tin:]                                      # (H1,  TB), lane-dense

    # One-pass feature statistics, lane-dense: std lands as (1, TB).
    inv_tin = 1.0 / tin
    s1 = jnp.sum(xT, axis=0, keepdims=True)          # (1, TB)
    s2 = jnp.sum(xT * xT, axis=0, keepdims=True)     # (1, TB)
    mean = s1 * inv_tin
    var = jnp.maximum(s2 * inv_tin - mean * mean, 0.0)   # clamp tiny negatives
    std = jnp.sqrt(var + 1e-5)                       # (1, TB)

    # Layer-1 epilogue: nonlinear std term + bias + ReLU.
    h = jnp.maximum(h + (std * w1sT_ref[...] + b1T_ref[...]), 0.0)   # (H1, TB)

    # Layer 2 + ReLU, output layer — all (features, TB) lane-dense.
    h = jnp.maximum(
        jnp.dot(w2T_ref[...], h, preferred_element_type=jnp.float32)
        + b2T_ref[...], 0.0)                                         # (H2, TB)
    out = jnp.dot(woT_ref[...], h, preferred_element_type=jnp.float32) \
        + boT_ref[...]                                               # (2, TB)
    outT_ref[...] = out.astype(outT_ref.dtype)


def _round_up(v, m):
    return -(-v // m) * m


def mustd_forward(x, params, *, tb=8192):
    """x: (B, Tin) float32 -> (B, 2) float32 (MuStdModel.forward)."""
    B, Tin = x.shape
    w1, b1, w2, b2, wo, bo = params            # weights stored as (in, out)
    assert w1.shape[0] == Tin + 2
    H1 = w1.shape[1]
    H2 = w2.shape[1]
    out_dim = wo.shape[1]

    # ---- parameter fold (done once; all arrays are tiny) --------------------
    # cat(x, mean, std) @ W1 == x @ (W1[:Tin] + W1[Tin]/Tin) + std * W1[Tin+1]
    w1x = w1[:Tin, :] + w1[Tin:Tin + 1, :] / Tin                 # (Tin, H1)
    # First-matmul LHS: [eye(Tin); W1x^T] — relayout + Linear in one MXU pass.
    w1aug = jnp.concatenate([jnp.eye(Tin, dtype=w1x.dtype), w1x.T], axis=0)
    w1sT = w1[Tin + 1:Tin + 2, :].T                              # (H1, 1)
    b1T = b1.T                                                   # (H1, 1)
    w2T = w2.T                                                   # (H2, H1)
    b2T = b2.T                                                   # (H2, 1)
    woT = wo.T                                                   # (2, H2)
    boT = bo.T                                                   # (2, 1)

    # ---- batch tiling: lane-dense tiles, >=2 tiles for v7x when possible ----
    assert tb % 128 == 0 and tb >= 128, "batch tile must be a multiple of 128"
    Bp128 = _round_up(max(B, 1), 128)          # pad even small B to 128 lanes
    if Bp128 <= tb:
        # small batch: split into two tiles once B >= 256 so both v7x cores work
        TB = _round_up(Bp128 // 2, 128) if Bp128 >= 256 else Bp128
    else:
        TB = tb
    num_tiles = pl.cdiv(Bp128, TB)
    if num_tiles > 1 and num_tiles % 2:
        # rebalance to an even tile count (equal work per v7x TensorCore)
        TB = _round_up(pl.cdiv(Bp128, num_tiles + 1), 128)
        num_tiles = pl.cdiv(Bp128, TB)
    Bp = num_tiles * TB
    xp = x if Bp == B else jnp.pad(x, ((0, Bp - B), (0, 0)))     # zero-pad tail

    def pspec(shape):
        # grid-invariant: DMA'd once, resident in VMEM across the batch loop
        return pl.BlockSpec(shape, lambda i: (0, 0))

    flops = int(2 * Bp * ((Tin + H1) * Tin + H1 * H2 + H2 * out_dim))
    bytes_accessed = int(4 * Bp * (Tin + out_dim) + 4 * (
        w1aug.size + w1sT.size + b1T.size + w2T.size + b2T.size
        + woT.size + boT.size))

    out_t = pl.pallas_call(
        _mustd_kernel,
        out_shape=jax.ShapeDtypeStruct((out_dim, Bp), jnp.float32),
        grid=(num_tiles,),
        in_specs=[
            pl.BlockSpec((TB, Tin), lambda i: (i, 0)),           # streamed x tiles
            pspec((Tin + H1, Tin)),                              # [eye; W1x^T]
            pspec((H1, 1)),                                      # std column
            pspec((H1, 1)),                                      # b1^T
            pspec((H2, H1)),                                     # W2^T
            pspec((H2, 1)),                                      # b2^T
            pspec((out_dim, H2)),                                # Wo^T
            pspec((out_dim, 1)),                                 # bo^T
        ],
        out_specs=pl.BlockSpec((out_dim, TB), lambda i: (0, i)), # lane-dense out
        compiler_params=pltpu.CompilerParams(
            dimension_semantics=("parallel",)),                  # v7x: 2 TCs
        cost_estimate=pl.CostEstimate(flops=flops,
                                      transcendentals=int(Bp),
                                      bytes_accessed=bytes_accessed),
    )(xp, w1aug, w1sT, b1T, w2T, b2T, woT, boT)

    return out_t[:, :B].T                                        # back to (B, 2)


# ----------------------------- init & reference ------------------------------

def _xavier_uniform(key, fan_in, fan_out):
    bound = math.sqrt(6.0 / (fan_in + fan_out))
    return jax.random.uniform(key, (fan_in, fan_out), jnp.float32, -bound, bound)


def _bias_init(key, fan_in, fan_out):
    # PyTorch nn.Linear default bias init: U(-1/sqrt(fan_in), 1/sqrt(fan_in))
    bound = 1.0 / math.sqrt(fan_in)
    return jax.random.uniform(key, (1, fan_out), jnp.float32, -bound, bound)


def make_params(key, Tin, hidden_dims, out_dim=2):
    """Weights stored as (in_features, out_features), i.e. nn.Linear.weight.T."""
    h1, h2 = hidden_dims
    ks = jax.random.split(key, 6)
    w1 = _xavier_uniform(ks[0], Tin + 2, h1)                     # (Tin+2, H1)
    b1 = _bias_init(ks[1], Tin + 2, h1)
    w2 = _xavier_uniform(ks[2], h1, h2)
    b2 = _bias_init(ks[3], h1, h2)
    wo = _xavier_uniform(ks[4], h2, out_dim)
    bo = _bias_init(ks[5], h2, out_dim)
    return (w1, b1, w2, b2, wo, bo)


def mustd_reference(x, params):
    """Pure-JAX reference matching the PyTorch forward exactly."""
    w1, b1, w2, b2, wo, bo = params
    mean = jnp.mean(x, axis=1, keepdims=True)
    std = jnp.sqrt(jnp.var(x, axis=1, keepdims=True, ddof=0) + 1e-5)
    xc = jnp.concatenate([x, mean, std], axis=1)
    h = jnp.maximum(xc @ w1 + b1, 0.0)
    h = jnp.maximum(h @ w2 + b2, 0.0)
    return h @ wo + bo
    # TODO(synk): dropout=0.0 is an identity in eval; nn.Dropout not implemented.


if __name__ == "__main__":
    Tin = 16
    hidden_dims = (32, 32)

    key = jax.random.PRNGKey(0)
    kx1, kx2, kx3, kp = jax.random.split(key, 4)
    params = make_params(kp, Tin, hidden_dims)

    # Case 1: tiny batch (B=8) -> padded to one full 128-lane tile.
    x1 = jax.random.normal(kx1, (8, Tin), dtype=jnp.float32)
    out1 = jax.block_until_ready(mustd_forward(x1, params))
    ref1 = mustd_reference(x1, params)
    assert out1.shape == (8, 2), out1.shape
    assert jnp.allclose(out1, ref1, atol=1e-4, rtol=1e-4), (
        f"max abs err {jnp.max(jnp.abs(out1 - ref1))}")

    # Case 2: multi-tile grid with zero-padded tail: B=200, tb=128 -> grid (2,).
    x2 = jax.random.normal(kx2, (200, Tin), dtype=jnp.float32)
    out2 = jax.block_until_ready(mustd_forward(x2, params, tb=128))
    ref2 = mustd_reference(x2, params)
    assert out2.shape == (200, 2), out2.shape
    assert jnp.allclose(out2, ref2, atol=1e-4, rtol=1e-4), (
        f"max abs err {jnp.max(jnp.abs(out2 - ref2))}")

    # Case 3: default tile size; batch auto-split into 2 equal tiles (v7x path).
    x3 = jax.random.normal(kx3, (1000, Tin), dtype=jnp.float32)
    out3 = jax.block_until_ready(mustd_forward(x3, params))
    ref3 = mustd_reference(x3, params)
    assert out3.shape == (1000, 2), out3.shape
    assert jnp.allclose(out3, ref3, atol=1e-4, rtol=1e-4), (
        f"max abs err {jnp.max(jnp.abs(out3 - ref3))}")

    print("KERNEL_OK")
</pallas_src>

<mosaic_0001>
module attributes {stable_mosaic.version = 11 : i64} {
  func.func @_mustd_kernel(%arg0: i32, %arg1: memref<128x16xf32, #tpu.memory_space<vmem>>, %arg2: memref<48x16xf32, #tpu.memory_space<vmem>>, %arg3: memref<32x1xf32, #tpu.memory_space<vmem>>, %arg4: memref<32x1xf32, #tpu.memory_space<vmem>>, %arg5: memref<32x32xf32, #tpu.memory_space<vmem>>, %arg6: memref<32x1xf32, #tpu.memory_space<vmem>>, %arg7: memref<2x32xf32, #tpu.memory_space<vmem>>, %arg8: memref<2x1xf32, #tpu.memory_space<vmem>>, %arg9: memref<2x128xf32, #tpu.memory_space<vmem>>) attributes {dimension_semantics = [#tpu.dimension_semantics<parallel>], iteration_bounds = array<i64: 1>, scalar_prefetch = 0 : i64, scratch_operands = 0 : i64, tpu.core_type = #tpu.core_type<tc>, window_params = [{transform_indices = @transform_0, window_bounds = array<i64: 128, 16>}, {pipeline_mode = #tpu.pipeline_mode<synchronous>, transform_indices = @transform_1, window_bounds = array<i64: 48, 16>}, {pipeline_mode = #tpu.pipeline_mode<synchronous>, transform_indices = @transform_2, window_bounds = array<i64: 32, 1>}, {pipeline_mode = #tpu.pipeline_mode<synchronous>, transform_indices = @transform_3, window_bounds = array<i64: 32, 1>}, {pipeline_mode = #tpu.pipeline_mode<synchronous>, transform_indices = @transform_4, window_bounds = array<i64: 32, 32>}, {pipeline_mode = #tpu.pipeline_mode<synchronous>, transform_indices = @transform_5, window_bounds = array<i64: 32, 1>}, {pipeline_mode = #tpu.pipeline_mode<synchronous>, transform_indices = @transform_6, window_bounds = array<i64: 2, 32>}, {pipeline_mode = #tpu.pipeline_mode<synchronous>, transform_indices = @transform_7, window_bounds = array<i64: 2, 1>}, {transform_indices = @transform_8, window_bounds = array<i64: 2, 128>}]} {
    %c0 = arith.constant 0 : index
    %c0_0 = arith.constant 0 : index
    %0 = vector.load %arg1[%c0, %c0_0] : memref<128x16xf32, #tpu.memory_space<vmem>>, vector<128x16xf32>
    %c0_1 = arith.constant 0 : index
    %c0_2 = arith.constant 0 : index
    %1 = vector.load %arg2[%c0_1, %c0_2] : memref<48x16xf32, #tpu.memory_space<vmem>>, vector<48x16xf32>
    %cst = arith.constant dense<0.000000e+00> : vector<48x128xf32>
    %2 = tpu.matmul %1, %0, %cst {dimension_numbers = #tpu.dot_dimension_numbers<[1], [1], [0], [0], [0, 0, 1, 0], [], []>} : vector<48x16xf32>, vector<128x16xf32>, vector<48x128xf32> -> vector<48x128xf32>
    %3 = vector.extract_strided_slice %2 {offsets = [0, 0], sizes = [16, 128], strides = [1, 1]} : vector<48x128xf32> to vector<16x128xf32>
    %4 = vector.extract_strided_slice %2 {offsets = [16, 0], sizes = [32, 128], strides = [1, 1]} : vector<48x128xf32> to vector<32x128xf32>
    %cst_3 = arith.constant dense<0.000000e+00> : vector<128xf32>
    %5 = vector.multi_reduction <add>, %3, %cst_3 [0] : vector<16x128xf32> to vector<128xf32>
    %6 = vector.shape_cast %5 : vector<128xf32> to vector<1x128xf32>
    %7 = arith.mulf %3, %3 : vector<16x128xf32>
    %cst_4 = arith.constant dense<0.000000e+00> : vector<128xf32>
    %8 = vector.multi_reduction <add>, %7, %cst_4 [0] : vector<16x128xf32> to vector<128xf32>
    %9 = vector.shape_cast %8 : vector<128xf32> to vector<1x128xf32>
    %cst_5 = arith.constant 6.250000e-02 : f32
    %10 = vector.broadcast %cst_5 : f32 to vector<1x128xf32>
    %11 = arith.mulf %6, %10 : vector<1x128xf32>
    %cst_6 = arith.constant 6.250000e-02 : f32
    %12 = vector.broadcast %cst_6 : f32 to vector<1x128xf32>
    %13 = arith.mulf %9, %12 : vector<1x128xf32>
    %14 = arith.mulf %11, %11 : vector<1x128xf32>
    %15 = arith.subf %13, %14 : vector<1x128xf32>
    %cst_7 = arith.constant 0.000000e+00 : f32
    %16 = vector.broadcast %cst_7 : f32 to vector<1x128xf32>
    %17 = arith.maximumf %15, %16 : vector<1x128xf32>
    %cst_8 = arith.constant 9.99999974E-6 : f32
    %18 = vector.broadcast %cst_8 : f32 to vector<1x128xf32>
    %19 = arith.addf %17, %18 : vector<1x128xf32>
    %20 = math.sqrt %19 : vector<1x128xf32>
    %c0_9 = arith.constant 0 : index
    %c0_10 = arith.constant 0 : index
    %21 = vector.load %arg3[%c0_9, %c0_10] : memref<32x1xf32, #tpu.memory_space<vmem>>, vector<32x1xf32>
    %22 = vector.broadcast %20 : vector<1x128xf32> to vector<32x128xf32>
    %23 = vector.broadcast %21 : vector<32x1xf32> to vector<32x128xf32>
    %24 = arith.mulf %22, %23 : vector<32x128xf32>
    %c0_11 = arith.constant 0 : index
    %c0_12 = arith.constant 0 : index
    %25 = vector.load %arg4[%c0_11, %c0_12] : memref<32x1xf32, #tpu.memory_space<vmem>>, vector<32x1xf32>
    %26 = vector.broadcast %25 : vector<32x1xf32> to vector<32x128xf32>
    %27 = arith.addf %24, %26 : vector<32x128xf32>
    %28 = arith.addf %4, %27 : vector<32x128xf32>
    %cst_13 = arith.constant 0.000000e+00 : f32
    %29 = vector.broadcast %cst_13 : f32 to vector<32x128xf32>
    %30 = arith.maximumf %28, %29 : vector<32x128xf32>
    %c0_14 = arith.constant 0 : index
    %c0_15 = arith.constant 0 : index
    %31 = vector.load %arg5[%c0_14, %c0_15] : memref<32x32xf32, #tpu.memory_space<vmem>>, vector<32x32xf32>
    %cst_16 = arith.constant dense<0.000000e+00> : vector<32x128xf32>
    %32 = tpu.matmul %31, %30, %cst_16 {dimension_numbers = #tpu.dot_dimension_numbers<[1], [0], [0], [1], [0, 0, 1, 1], [], []>} : vector<32x32xf32>, vector<32x128xf32>, vector<32x128xf32> -> vector<32x128xf32>
    %c0_17 = arith.constant 0 : index
    %c0_18 = arith.constant 0 : index
    %33 = vector.load %arg6[%c0_17, %c0_18] : memref<32x1xf32, #tpu.memory_space<vmem>>, vector<32x1xf32>
    %34 = vector.broadcast %33 : vector<32x1xf32> to vector<32x128xf32>
    %35 = arith.addf %32, %34 : vector<32x128xf32>
    %cst_19 = arith.constant 0.000000e+00 : f32
    %36 = vector.broadcast %cst_19 : f32 to vector<32x128xf32>
    %37 = arith.maximumf %35, %36 : vector<32x128xf32>
    %c0_20 = arith.constant 0 : index
    %c0_21 = arith.constant 0 : index
    %38 = vector.load %arg7[%c0_20, %c0_21] : memref<2x32xf32, #tpu.memory_space<vmem>>, vector<2x32xf32>
    %cst_22 = arith.constant dense<0.000000e+00> : vector<2x128xf32>
    %39 = tpu.matmul %38, %37, %cst_22 {dimension_numbers = #tpu.dot_dimension_numbers<[1], [0], [0], [1], [0, 0, 1, 1], [], []>} : vector<2x32xf32>, vector<32x128xf32>, vector<2x128xf32> -> vector<2x128xf32>
    %c0_23 = arith.constant 0 : index
    %c0_24 = arith.constant 0 : index
    %40 = vector.load %arg8[%c0_23, %c0_24] : memref<2x1xf32, #tpu.memory_space<vmem>>, vector<2x1xf32>
    %41 = vector.broadcast %40 : vector<2x1xf32> to vector<2x128xf32>
    %42 = arith.addf %39, %41 : vector<2x128xf32>
    %c0_25 = arith.constant 0 : index
    %c0_26 = arith.constant 0 : index
    %43 = vector.load %arg9[%c0_25, %c0_26] : memref<2x128xf32, #tpu.memory_space<vmem>>, vector<2x128xf32>
    tpu.vector_store %arg9[%c0_25, %c0_26], %42 {strides = array<i32>} : memref<2x128xf32, #tpu.memory_space<vmem>>, vector<2x128xf32>,
    return
  }
  func.func @transform_0(%arg0: i32) -> (i32, i32) {
    %c0_i32 = arith.constant 0 : i32
    %c0_i32_0 = arith.constant 0 : i32
    return %arg0, %c0_i32 : i32, i32
  }
  func.func @transform_1(%arg0: i32) -> (i32, i32) {
    %c0_i32 = arith.constant 0 : i32
    %c0_i32_0 = arith.constant 0 : i32
    %c0_i32_1 = arith.constant 0 : i32
    return %c0_i32, %c0_i32_0 : i32, i32
  }
  func.func @transform_2(%arg0: i32) -> (i32, i32) {
    %c0_i32 = arith.constant 0 : i32
    %c0_i32_0 = arith.constant 0 : i32
    %c0_i32_1 = arith.constant 0 : i32
    return %c0_i32, %c0_i32_0 : i32, i32
  }
  func.func @transform_3(%arg0: i32) -> (i32, i32) {
    %c0_i32 = arith.constant 0 : i32
    %c0_i32_0 = arith.constant 0 : i32
    %c0_i32_1 = arith.constant 0 : i32
    return %c0_i32, %c0_i32_0 : i32, i32
  }
  func.func @transform_4(%arg0: i32) -> (i32, i32) {
    %c0_i32 = arith.constant 0 : i32
    %c0_i32_0 = arith.constant 0 : i32
    %c0_i32_1 = arith.constant 0 : i32
    return %c0_i32, %c0_i32_0 : i32, i32
  }
  func.func @transform_5(%arg0: i32) -> (i32, i32) {
    %c0_i32 = arith.constant 0 : i32
    %c0_i32_0 = arith.constant 0 : i32
    %c0_i32_1 = arith.constant 0 : i32
    return %c0_i32, %c0_i32_0 : i32, i32
  }
  func.func @transform_6(%arg0: i32) -> (i32, i32) {
    %c0_i32 = arith.constant 0 : i32
    %c0_i32_0 = arith.constant 0 : i32
    %c0_i32_1 = arith.constant 0 : i32
    return %c0_i32, %c0_i32_0 : i32, i32
  }
  func.func @transform_7(%arg0: i32) -> (i32, i32) {
    %c0_i32 = arith.constant 0 : i32
    %c0_i32_0 = arith.constant 0 : i32
    %c0_i32_1 = arith.constant 0 : i32
    return %c0_i32, %c0_i32_0 : i32, i32
  }
  func.func @transform_8(%arg0: i32) -> (i32, i32) {
    %c0_i32 = arith.constant 0 : i32
    %c0_i32_0 = arith.constant 0 : i32
    return %c0_i32, %arg0 : i32, i32
  }
}

</mosaic_0001>

<bundles_post_ra>
// kernel: tpu_custom_call.1
= control target key start
LH: loop header
LB: loop body
LE: loop exit
PB: predicated region body
PF: predicated region fallthrough
CT: control target
= control target key end

     0   :  { %vm52_vm0 = vcmask 130048   ;;  %s662_s0 = inlined_call_operand.vmem [shape: f32[128,16], index: 0, kind: input, shape index: {}]   ;;  %s663_s1 = inlined_call_operand.vmem [shape: f32[48,16], index: 1, kind: input, shape index: {}]   ;;  %s664_s2 = inlined_call_operand.vmem [shape: f32[32,1], index: 2, kind: input, shape index: {}]   ;;  %s665_s3 = inlined_call_operand.vmem [shape: f32[32,1], index: 3, kind: input, shape index: {}]   ;;  %s666_s4 = inlined_call_operand.vmem [shape: f32[32,32], index: 4, kind: input, shape index: {}]   ;;  %s667_s5 = inlined_call_operand.vmem [shape: f32[32,1], index: 5, kind: input, shape index: {}]   ;;  %s668_s6 = inlined_call_operand.vmem [shape: f32[2,32], index: 6, kind: input, shape index: {}]   ;;  %s669_s7 = inlined_call_operand.vmem [shape: f32[2,1], index: 7, kind: input, shape index: {}]   ;;  %s670_s8 = inlined_call_operand.hbm [shape: f32[2,128], index: 8, kind: output, shape index: {}]  }
   0x1   :  { %v45_v0 = vld [vmem:[%s662_s0 + $0x78] sm:$0xff]  ;;  %v44_v1 = vld [vmem:[%s662_s0 + $0x70] sm:$0xff] }
   0x2   :  { %400 = vmatpush.xpose.msk.msra.mxu3 %vm52_vm0, %v45_v0  ;;  %373 = vmatpush.xpose.msk.msra.mxu0 %vm52_vm0, %v45_v0 }
   0x3   :  { %13 = vsyncpa [#allocation3], 0  ;;  %v43_v2 = vld [vmem:[%s662_s0 + $0x68] sm:$0xff]  ;;  %v42_v3 = vld [vmem:[%s662_s0 + $0x60] sm:$0xff]  ;;  %v449_v11 = vmov 0   ;;  %vm280_vm3 = vcmask 261120  }
   0x4   :  { %v41_v4 = vld [vmem:[%s662_s0 + $0x58] sm:$0xff]  ;;  %v40_v5 = vld [vmem:[%s662_s0 + $0x50] sm:$0xff]  ;;  %v39_v6 = vld [vmem:[%s662_s0 + $0x48] sm:$0xff]  ;;  %418 = vset.pattern.permute.xlu0 %v449_v11  ;;  %419 = vset.pattern.permute.xlu1 %v449_v11  ;;  %s364_s15 = sshll.u32 %s670_s8, 4  ;;  %s365_s15 = int_to_ptr.hbm [resolvable:$true] %s364_s15 }
   0x5   :  { %v38_v7 = vld [vmem:[%s662_s0 + $0x40] sm:$0xff]  ;;  %v37_v8 = vld [vmem:[%s662_s0 + $0x38] sm:$0xff]  ;;  %v36_v10 = vld [vmem:[%s662_s0 + $0x30] sm:$0xff]  ;;  %420 = vset.pattern.permute.xlu2 %v449_v11 }
   0x6   :  { %401 = vmatpush.xpose.msk.msra.mxu3 %vm52_vm0, %v44_v1  ;;  %374 = vmatpush.xpose.msk.msra.mxu0 %vm52_vm0, %v44_v1  ;;  %v191_v9 = vld [vmem:[%s664_s2 + $0x18] sm:$0xff]  ;;  %v35_v12 = vld [vmem:[%s662_s0 + $0x28] sm:$0xff]  ;;  %v190_v13 = vld [vmem:[%s664_s2 + $0x10] sm:$0xff] }
   0x7   :  { %209 = vperm.xlu0 %418, %v191_v9   ;;  %v219_v14 = vld [vmem:[%s665_s3 + $0x18] sm:$0xff]  ;;  %v34_v15 = vld [vmem:[%s662_s0 + $0x20] sm:$0xff]  ;;  %v217_v17 = vld [vmem:[%s665_s3 + $0x8] sm:$0xff] }
   0x8   :  { %237 = vperm.xlu1 %419, %v219_v14   ;;  %v33_v16 = vld [vmem:[%s662_s0 + $0x18] sm:$0xff]  ;;  %v189_v18 = vld [vmem:[%s664_s2 + $0x8] sm:$0xff]  ;;  %v32_v19 = vld [vmem:[%s662_s0 + $0x10] sm:$0xff] }
   0x9   :  { %v31_v20 = vld [vmem:[%s662_s0 + $0x8] sm:$0xff]  ;;  %v258_v21 = vld [vmem:[%s667_s5 + $0x10] sm:$0xff]  ;;  %v216_v22 = vld [vmem:[%s665_s3] sm:$0xff] }
   0xa   :  { %402 = vmatpush.xpose.msk.msra.mxu3 %vm52_vm0, %v43_v2  ;;  %375 = vmatpush.xpose.msk.msra.mxu0 %vm52_vm0, %v43_v2  ;;  %v30_v23 = vld [vmem:[%s662_s0] sm:$0xff]  ;;  %v47_v24 = vld [vmem:[%s663_s1 + $0x8] sm:$0xff]  ;;  %v218_v28 = vld [vmem:[%s665_s3 + $0x10] sm:$0xff]  ;;  %s450_s0 = smov [#allocation2]  }
   0xb   :  { %v46_v25 = vld [vmem:[%s663_s1] sm:$0xff]  ;;  %v257_v27 = vld [vmem:[%s667_s5 + $0x8] sm:$0xff]  ;;  %232 = vperm.xlu2 %420, %v218_v28   ;;  %v48_v29 = vld [vmem:[%s663_s1 + $0x10] sm:$0xff]  ;;  %s362_s12 = sshll.u32 %s450_s0, 4  ;;  %s363_s12 = int_to_ptr.vmem [resolvable:$true] %s362_s12 }
   0xc   :  { %v327_v26 = vld [vmem:[%s669_s7] sm:$0x3]  ;;  %v49_v31 = vld [vmem:[%s663_s1 + $0x18] sm:$0xff]  ;;  %v51_v35 = vld [vmem:[%s663_s1 + $0x28] sm:$0xff] }
   0xd   :  { %v188_v30 = vld [vmem:[%s664_s2] sm:$0xff]  ;;  %v259_v32 = vld [vmem:[%s667_s5 + $0x18] sm:$0xff] }
   0xe   :  { %403 = vmatpush.xpose.msk.msra.mxu3 %vm52_vm0, %v42_v3  ;;  %376 = vmatpush.xpose.msk.msra.mxu0 %vm52_vm0, %v42_v3  ;;  %v50_v33 = vld [vmem:[%s663_s1 + $0x20] sm:$0xff] }
   0xf   :  { %204 = vperm.xlu0 %418, %v190_v13   ;;  %v256_v34 = vld [vmem:[%s667_s5] sm:$0xff] }
  0x10   :  { %199 = vperm.xlu1 %419, %v189_v18  }
  0x12   :  { %404 = vmatpush.xpose.msk.msra.mxu3 %vm52_vm0, %v41_v4  ;;  %377 = vmatpush.xpose.msk.msra.mxu0 %vm52_vm0, %v41_v4 }
  0x13   :  { %194 = vperm.xlu2 %420, %v188_v30  }
  0x16   :  { %405 = vmatpush.xpose.msk.msra.mxu3 %vm52_vm0, %v40_v5  ;;  %378 = vmatpush.xpose.msk.msra.mxu0 %vm52_vm0, %v40_v5 }
  0x17   :  { %227 = vperm.xlu0 %418, %v217_v17  }
  0x18   :  { %222 = vperm.xlu1 %419, %v216_v22  }
  0x1a   :  { %406 = vmatpush.xpose.msk.msra.mxu3 %vm52_vm0, %v39_v6  ;;  %379 = vmatpush.xpose.msk.msra.mxu0 %vm52_vm0, %v39_v6 }
  0x1b   :  { %277 = vperm.xlu2 %420, %v259_v32  }
  0x1e   :  { %407 = vmatpush.xpose.msk.msra.mxu3 %vm52_vm0, %v38_v7  ;;  %380 = vmatpush.xpose.msk.msra.mxu0 %vm52_vm0, %v38_v7 }
  0x1f   :  { %272 = vperm.xlu0 %418, %v258_v21  }
  0x20   :  { %267 = vperm.xlu1 %419, %v257_v27  }
  0x22   :  { %408 = vmatpush.xpose.msk.msra.mxu3 %vm52_vm0, %v37_v8  ;;  %381 = vmatpush.xpose.msk.msra.mxu0 %vm52_vm0, %v37_v8 }
  0x23   :  { %262 = vperm.xlu2 %420, %v256_v34   ;;  %v252_v34 = vld [vmem:[%s666_s4] sm:$0xff] }
  0x26   :  { %409 = vmatpush.xpose.msk.msra.mxu3 %vm52_vm0, %v36_v10  ;;  %382 = vmatpush.xpose.msk.msra.mxu0 %vm52_vm0, %v36_v10 }
  0x27   :  { %330 = vperm.xlu0 %418, %v327_v26  }
  0x2a   :  { %410 = vmatpush.xpose.msk.msra.mxu3 %vm52_vm0, %v35_v12  ;;  %383 = vmatpush.xpose.msk.msra.mxu0 %vm52_vm0, %v35_v12 }
  0x2e   :  { %411 = vmatpush.xpose.msk.msra.mxu3 %vm52_vm0, %v34_v15  ;;  %384 = vmatpush.xpose.msk.msra.mxu0 %vm52_vm0, %v34_v15 }
  0x32   :  { %412 = vmatpush.xpose.msk.msra.mxu3 %vm52_vm0, %v33_v16  ;;  %385 = vmatpush.xpose.msk.msra.mxu0 %vm52_vm0, %v33_v16 }
  0x36   :  { %413 = vmatpush.xpose.msk.msra.mxu3 %vm52_vm0, %v32_v19  ;;  %386 = vmatpush.xpose.msk.msra.mxu0 %vm52_vm0, %v32_v19 }
  0x3a   :  { %414 = vmatpush.xpose.msk.msra.mxu3 %vm52_vm0, %v31_v20  ;;  %387 = vmatpush.xpose.msk.msra.mxu0 %vm52_vm0, %v31_v20 }
  0x3e   :  { %415 = vmatpush.xpose.msk.msra.mxu3 %vm52_vm0, %v30_v23  ;;  %388 = vmatpush.xpose.msk.msra.mxu0 %vm52_vm0, %v30_v23 }
  0x41   :  { %390 = vmatmul.msk.f32.vlgmr.msra.gmra.mxu3 %vm52_vm0, %v47_v24  ;;  %389 = vmatmul.msk.f32.vlgmr.msra.gmra.mxu0 %vm52_vm0, %v46_v25 }
  0x49   :  { %391 = vmatmul.msk.f32.gmra.mxu3 %vm52_vm0, %v48_v29 }
  0x51   :  { %392 = vmatmul.msk.f32.gmra.mxu3 %vm52_vm0, %v49_v31 }
  0x59   :  { %393 = vmatmul.msk.f32.gmra.mxu3 %vm52_vm0, %v50_v33 }
  0x61   :  { %394 = vmatmul.msk.f32.gmra.mxu3 %vm52_vm0, %v51_v35  ;;  %v253_v35 = vld [vmem:[%s666_s4 + $0x8] sm:$0xff] }
  0x65   :  { %v233_v3 = vpop.permute.xlu2 %232 }
  0x6d   :  { %v195_v14 = vpop.permute.xlu2 %194 }
  0x79   :  { %v210_v61 = vpop.permute.xlu0 %209 }
  0x7a   :  { %v238_v63 = vpop.permute.xlu1 %237 }
  0x81   :  { %v205_v5 = vpop.permute.xlu0 %204 }
  0x82   :  { %v200_v8 = vpop.permute.xlu1 %199 }
  0x89   :  { %v228_v19 = vpop.permute.xlu0 %227 }
  0x8a   :  { %v223_v24 = vpop.permute.xlu1 %222 }
  0xbe   :  { %v136_v36 = vpop.f32.mrf.mxu0 }
  0xbf   :  { %v161_v37 = vmul.f32 %v136_v36, %v136_v36 }
  0xc4   :  { %v139_v38 = vpop.f32.mrf.mxu3 }
  0xc5   :  { %v154_v39 = vadd.f32 %v139_v38, %v136_v36  ;;  %v162_v40 = vmul.f32 %v139_v38, %v139_v38  ;;  %v254_v36 = vld [vmem:[%s666_s4 + $0x10] sm:$0xff] }
  0xc7   :  { %v155_v41 = vrot.slane %v154_v39, 4  ;;  %v163_v42 = vadd.f32 %v162_v40, %v161_v37  ;;  %v255_v37 = vld [vmem:[%s666_s4 + $0x18] sm:$0xff] }
  0xc9   :  { %v156_v43 = vadd.f32 %v155_v41, %v154_v39  ;;  %v164_v44 = vrot.slane %v163_v42, 4  ;;  %v278_v41 = vpop.permute.xlu2 %277 }
  0xcb   :  { %v157_v45 = vrot.slane %v156_v43, 2  ;;  %v165_v46 = vadd.f32 %v164_v44, %v163_v42  ;;  %v273_v42 = vpop.permute.xlu0 %272 }
  0xcc   :  { %v142_v57 = vpop.f32.mrf.mxu3 }
  0xcd   :  { %v158_v47 = vadd.f32 %v157_v45, %v156_v43  ;;  %v166_v48 = vrot.slane %v165_v46, 2 }
  0xcf   :  { %v159_v49 = vrot.slane %v158_v47, 1  ;;  %v167_v50 = vadd.f32 %v166_v48, %v165_v46  ;;  %v268_v46 = vpop.permute.xlu1 %267 }
  0xd1   :  { %v160_v51 = vadd.f32 %v159_v49, %v158_v47  ;;  %v168_v52 = vrot.slane %v167_v50, 1  ;;  %v263_v49 = vpop.permute.xlu2 %262 }
  0xd3   :  { %v169_v53 = vadd.f32 %v168_v52, %v167_v50  ;;  %v170_v54 = vmul.f32 0.0625, %v160_v51 }
  0xd4   :  { %v145_v62 = vpop.f32.mrf.mxu3 }
  0xd5   :  { %v171_v55 = vmul.f32 0.0625, %v169_v53  ;;  %v172_v56 = vmul.f32 %v170_v54, %v170_v54  ;;  %v326_v54 = vld [vmem:[%s668_s6] sm:$0x3] }
  0xd7   :  { %v173_v58 = vsub.f32 %v171_v55, %v172_v56  ;;  %v331_v55 = vpop.permute.xlu0 %330 }
  0xd9   :  { %v174_v59 = vmax.f32 %v173_v58, 0.0 }
  0xdb   :  { %v175_v60 = vadd.f32 1e-05, %v174_v59 }
  0xdc   :  { %v148_v6 = vpop.f32.mrf.mxu3 }
  0xdd   :  { %421 = vrsqrt.f32 %v175_v60  ;;  %vm183_vm1 = vcmp.eq.f32.partialorder %v175_v60, inf  ;;  %v186_v11 = vand.u32 2147483648, %v175_v60  ;;  %vm185_vm2 = vcmp.eq.f32.partialorder %v175_v60, 0.0 }
  0xe3   :  { %v422_v0 = vpop.eup %421 }
  0xe4   :  { %v177_v1 = vmul.f32 %v422_v0, %v175_v60  ;;  %v151_v20 = vpop.f32.mrf.mxu3 }
  0xe6   :  { %v178_v2 = vmul.f32 %v422_v0, %v177_v1 }
  0xe8   :  { %v179_v4 = vmul.f32 0.5, %v178_v2 }
  0xea   :  { %v180_v7 = vsub.f32 1.5, %v179_v4 }
  0xec   :  { %v181_v9 = vmul.f32 %v422_v0, %v180_v7 }
  0xee   :  { %v182_v10 = vmul.f32 %v181_v9, %v175_v60 }
  0xf0   :  { %v184_v12 = vsel %vm183_vm1, %v175_v60, %v182_v10 }
  0xf1   :  { %v187_v13 = vsel %vm185_vm2, %v186_v11, %v184_v12 }
  0xf2   :  { %v215_v15 = vmul.f32 %v210_v61, %v187_v13  ;;  %v214_v16 = vmul.f32 %v205_v5, %v187_v13  ;;  %v213_v17 = vmul.f32 %v200_v8, %v187_v13  ;;  %v212_v18 = vmul.f32 %v195_v14, %v187_v13 }
  0xf4   :  { %v243_v21 = vadd.f32 %v238_v63, %v215_v15  ;;  %v242_v22 = vadd.f32 %v233_v3, %v214_v16  ;;  %v241_v23 = vadd.f32 %v228_v19, %v213_v17  ;;  %v240_v25 = vadd.f32 %v223_v24, %v212_v18 }
  0xf6   :  { %v246_v26 = vadd.f32 %v242_v22, %v148_v6  ;;  %v247_v27 = vadd.f32 %v243_v21, %v151_v20  ;;  %v245_v28 = vadd.f32 %v241_v23, %v145_v62  ;;  %v244_v31 = vadd.f32 %v240_v25, %v142_v57 }
  0xf8   :  { %v251_v29 = vmax.f32 %v247_v27, 0.0  ;;  %v250_v30 = vmax.f32 %v246_v26, 0.0  ;;  %v249_v32 = vmax.f32 %v245_v28, 0.0  ;;  %v248_v33 = vmax.f32 %v244_v31, 0.0 }
  0xfa   :  { %305 = vmatpush.msra.mxu1 %v251_v29 }
  0xfc   :  { %306 = vmatpush.msra.mxu1 %v250_v30 }
  0xfe   :  { %307 = vmatpush.msra.mxu1 %v249_v32 }
 0x100   :  { %308 = vmatpush.msra.mxu1 %v248_v33 }
 0x101   :  { %395 = vmatmul.msk.f32.vlgmr.msra.gmra.mxu1 %vm280_vm3, %v252_v34 }
 0x109   :  { %396 = vmatmul.msk.f32.gmra.mxu1 %vm280_vm3, %v253_v35 }
 0x111   :  { %397 = vmatmul.msk.f32.gmra.mxu1 %vm280_vm3, %v254_v36 }
 0x119   :  { %398 = vmatmul.msk.f32.gmra.mxu1 %vm280_vm3, %v255_v37 }
 0x17e   :  { %v310_v38 = vpop.f32.mrf.mxu1 }
 0x17f   :  { %v311_v50 = vadd.f32 %v310_v38, %v263_v49 }
 0x181   :  { %v322_v53 = vmax.f32 %v311_v50, 0.0 }
 0x186   :  { %v313_v39 = vpop.f32.mrf.mxu1 }
 0x187   :  { %v314_v47 = vadd.f32 %v313_v39, %v268_v46 }
 0x189   :  { %v323_v52 = vmax.f32 %v314_v47, 0.0 }
 0x18e   :  { %v316_v40 = vpop.f32.mrf.mxu1 }
 0x18f   :  { %v317_v44 = vadd.f32 %v316_v40, %v273_v42 }
 0x191   :  { %v324_v51 = vmax.f32 %v317_v44, 0.0 }
 0x196   :  { %v319_v43 = vpop.f32.mrf.mxu1 }
 0x197   :  { %v320_v45 = vadd.f32 %v319_v43, %v278_v41 }
 0x199   :  { %v325_v48 = vmax.f32 %v320_v45, 0.0 }
 0x19b   :  { %348 = vmatpush.msra.mxu2 %v325_v48 }
 0x19d   :  { %349 = vmatpush.msra.mxu2 %v324_v51 }
 0x19f   :  { %350 = vmatpush.msra.mxu2 %v323_v52 }
 0x1a1   :  { %351 = vmatpush.msra.mxu2 %v322_v53 }
 0x1a2   :  { %399 = vmatmul.msk.f32.vlgmr.msra.gmra.mxu2 %vm280_vm3, %v326_v54 }
 0x225   :  { %v353_v56 = vpop.f32.mrf.mxu2 }
 0x226   :  { %v354_v57 = vadd.f32 %v353_v56, %v331_v55 }
 0x228   :  { %356 = vst [vmem:[#allocation2] sm:$0x3] %v354_v57 }
 0x229   :  { %367 = dma.vmem_to_hbm [thread:$0]  %s363_s12, 32, %s365_s15, [#allocation3]  }
 0x22a   :  { %447 = dma.done.wait [#allocation3], 32  }
 0x22b   :  { %448 = vsyncadd [#allocation3], 4294967264 }
 0x22c   :  { %372 = vsyncpa [#allocation3], 1 }

</bundles_post_ra>
